<compile_context>
chip_gen: v7x
topology: tpu7x:2x2x1
jax: 0.10.0
libtpu: 0.0.40
codegen_flags: <defaults>
</compile_context>

<pallas_src>
import jax
import jax.numpy as jnp
from jax.experimental import pallas as pl
from jax.experimental.pallas import tpu as pltpu


# ----------------------------------------------------------------------------
# Production forward: identity, zero cost. This is the recommended path.
# ----------------------------------------------------------------------------
def gst_provider_forward(gst: jax.Array) -> jax.Array:
    """GSTProvider.forward(): returns the stored token table. No kernel launch,
    no DMA — XLA fuses the table read directly into whatever consumes it."""
    return gst


# ----------------------------------------------------------------------------
# Optional kernel-boundary variant (only if a Pallas boundary is required for
# composition, e.g. a P10-style cross-call handoff). Grid-less, full-array
# block, no reshape, no aliasing.
# ----------------------------------------------------------------------------
def _gst_identity_kernel(gst_ref, out_ref):
    out_ref[...] = gst_ref[...]


def gst_provider_forward_kernel(gst: jax.Array) -> jax.Array:
    return pl.pallas_call(
        _gst_identity_kernel,
        out_shape=jax.ShapeDtypeStruct(gst.shape, gst.dtype),
        in_specs=[pl.BlockSpec(memory_space=pltpu.MemorySpace.VMEM)],
        out_specs=pl.BlockSpec(memory_space=pltpu.MemorySpace.VMEM),
    )(gst)


# ----------------------------------------------------------------------------
# Recommended consumer-fusion pattern: the GST table rides along as a resident
# VMEM input of the downstream kernel (here: a weighted-sum / style-attention
# readout  out[b, :] = weights[b, :] @ gst). index_map returns (0, 0) for every
# grid step, so the 1 KiB table is DMA'd once and reused across the grid.
# ----------------------------------------------------------------------------
def _style_embedding_kernel(w_ref, gst_ref, out_ref):
    out_ref[...] = jnp.dot(
        w_ref[...], gst_ref[...], preferred_element_type=jnp.float32
    ).astype(out_ref.dtype)


def style_embedding(weights: jax.Array, gst: jax.Array, *, tb: int = 8) -> jax.Array:
    """Fused consumer: per-utterance style embedding = attention weights @ GST table."""
    B, T = weights.shape
    T2, D = gst.shape
    assert T == T2, "weights last dim must equal gst_token_count"
    grid = (pl.cdiv(B, tb),)
    return pl.pallas_call(
        _style_embedding_kernel,
        out_shape=jax.ShapeDtypeStruct((B, D), jnp.float32),
        grid_spec=pltpu.PrefetchScalarGridSpec(
            num_scalar_prefetch=0,
            grid=grid,
            in_specs=[
                pl.BlockSpec((tb, T), lambda i: (i, 0)),     # per-step weight tile
                pl.BlockSpec((T2, D), lambda i: (0, 0)),     # GST table: resident
            ],
            out_specs=pl.BlockSpec((tb, D), lambda i: (i, 0)),
        ),
        compiler_params=pltpu.CompilerParams(dimension_semantics=("parallel",)),
    )(weights, gst)


def make_gst_params(gst_embedding_dim: int, gst_token_count: int, key) -> jax.Array:
    """Stand-in for torch.randn(gst_token_count, gst_embedding_dim), requires_grad=False."""
    # TODO(synk): store as bf16 if downstream consumers accept it (native MXU dtype).
    return jax.random.normal(
        key, (gst_token_count, gst_embedding_dim), dtype=jnp.float32
    )


if __name__ == "__main__":
    # Small shapes consistent with the module: 8 tokens, 32-dim embeddings.
    GST_TOKEN_COUNT = 8
    GST_EMBEDDING_DIM = 32
    BATCH = 16

    key = jax.random.PRNGKey(0)
    k_gst, k_w = jax.random.split(key)
    gst = make_gst_params(GST_EMBEDDING_DIM, GST_TOKEN_COUNT, k_gst)

    # 1) Production forward: pure identity (no kernel).
    out_prod = gst_provider_forward(gst)
    assert out_prod is gst

    # 2) Kernel-boundary variant: bit-exact identity through a grid-less pallas_call.
    out_kernel = jax.block_until_ready(gst_provider_forward_kernel(gst))
    assert out_kernel.shape == (GST_TOKEN_COUNT, GST_EMBEDDING_DIM)
    assert out_kernel.dtype == gst.dtype
    assert bool(jnp.all(out_kernel == gst))

    # 3) Fused-consumer pattern: GST table resident in VMEM inside the consumer kernel.
    weights = jax.nn.softmax(
        jax.random.normal(k_w, (BATCH, GST_TOKEN_COUNT), dtype=jnp.float32), axis=-1
    )
    emb = jax.block_until_ready(style_embedding(weights, gst, tb=8))
    ref = weights @ gst
    assert emb.shape == (BATCH, GST_EMBEDDING_DIM)
    assert bool(jnp.allclose(emb, ref, atol=1e-5, rtol=1e-5))

    print("KERNEL_OK")
</pallas_src>

<mosaic_0001>
module attributes {stable_mosaic.version = 11 : i64} {
  func.func @_gst_identity_kernel(%arg0: memref<8x32xf32, #tpu.memory_space<vmem>>, %arg1: memref<8x32xf32, #tpu.memory_space<vmem>>) attributes {dimension_semantics = [], scalar_prefetch = 0 : i64, scratch_operands = 0 : i64, tpu.core_type = #tpu.core_type<tc>} {
    %c0 = arith.constant 0 : index
    %c0_0 = arith.constant 0 : index
    %0 = vector.load %arg0[%c0, %c0_0] : memref<8x32xf32, #tpu.memory_space<vmem>>, vector<8x32xf32>
    %c0_1 = arith.constant 0 : index
    %c0_2 = arith.constant 0 : index
    %1 = vector.load %arg1[%c0_1, %c0_2] : memref<8x32xf32, #tpu.memory_space<vmem>>, vector<8x32xf32>
    tpu.vector_store %arg1[%c0_1, %c0_2], %0 {strides = array<i32>} : memref<8x32xf32, #tpu.memory_space<vmem>>, vector<8x32xf32>,
    return
  }
}

</mosaic_0001>

<bundles_post_ra>
// kernel: tpu_custom_call.1
= control target key start
LH: loop header
LB: loop body
LE: loop exit
PB: predicated region body
PF: predicated region fallthrough
CT: control target
= control target key end

     0   :  { %6 = vsyncpa [#allocation3], 0  ;;  %s125_s0 = inlined_call_operand.hbm [shape: f32[8,32], index: 0, kind: input, shape index: {}]   ;;  %s126_s1 = inlined_call_operand.hbm [shape: f32[8,32], index: 1, kind: output, shape index: {}]  }
   0x1   :  { %7 = vsyncpa [#allocation4], 0  ;;  %s89_s6 = smov [#allocation2]   ;;  %s41_s10 = scalar_lea.hbm %s125_s0, 128 }
   0x2   :  { %s14_s7 = sshll.u32 %s89_s6, 4  ;;  %p42_p0 = scmp.ne.s32.totalorder %s125_s0, %s41_s10  ;;  %s15_s7 = int_to_ptr.vmem [resolvable:$true] %s14_s7 }
   0x3   :  { %p45_p1 = scmp.lt.u32.totalorder %s41_s10, %s125_s0 }
   0x5   :  { %p47_p2 = pnand %p45_p1, %p42_p0 }
   0x7   :  { %50 = shalt.err (!%p47_p2)
}
   0x8   :  { %s51_s15 = scalar_lea.vmem %s15_s7, 128  ;;  %p56_p4 = scmp.lt.s32.totalorder %s15_s7, %s15_s7 }
   0x9   :  { %p52_p3 = scmp.ne.s32.totalorder %s15_s7, %s51_s15  ;;  %p57_p5 = scmp.lt.s32.totalorder %s51_s15, %s51_s15 }
   0xb   :  { %p58_p6 = por %p57_p5, %p56_p4 }
   0xd   :  { %p59_p7 = pnand %p58_p6, %p52_p3 }
   0xf   :  { %62 = shalt.err (!%p59_p7)
}
  0x10   :  { %17 = dma.hbm_to_vmem [thread:$0]  %s125_s0, 128, %s15_s7, [#allocation3]  }
  0x11   :  { %85 = dma.done.wait [#allocation3], 128  }
  0x12   :  { %86 = vsyncadd [#allocation3], 4294967168  ;;  %s90_s18 = smov [#allocation5]   ;;  %vm22_vm0 = vcmask 261120   ;;  %v21_v0 = vld [vmem:[#allocation2] sm:$0xff] }
  0x13   :  { %s30_s19 = sshll.u32 %s90_s18, 4  ;;  %23 = vst.msk [vmem:[#allocation5] sm:$0xff] %vm22_vm0, %v21_v0  ;;  %s31_s19 = int_to_ptr.vmem [resolvable:$true] %s30_s19 }
  0x14   :  { %s63_s20 = scalar_lea.vmem %s31_s19, 128  ;;  %p68_p9 = scmp.lt.s32.totalorder %s31_s19, %s31_s19 }
  0x15   :  { %p64_p8 = scmp.ne.s32.totalorder %s31_s19, %s63_s20  ;;  %p69_p10 = scmp.lt.s32.totalorder %s63_s20, %s63_s20 }
  0x17   :  { %p70_p11 = por %p69_p10, %p68_p9 }
  0x19   :  { %p71_p12 = pnand %p70_p11, %p64_p8 }
  0x1b   :  { %74 = shalt.err (!%p71_p12)
}
  0x1c   :  { %s75_s23 = scalar_lea.hbm %s126_s1, 128 }
  0x1d   :  { %p76_p13 = scmp.ne.s32.totalorder %s126_s1, %s75_s23  ;;  %p79_p0 = scmp.lt.u32.totalorder %s75_s23, %s126_s1 }
  0x1f   :  { %p81_p1 = pnand %p79_p0, %p76_p13 }
  0x21   :  { %84 = shalt.err (!%p81_p1)
}
  0x22   :  { %33 = dma.vmem_to_hbm [thread:$0]  %s31_s19, 128, %s126_s1, [#allocation4]  }
  0x23   :  { %87 = dma.done.wait [#allocation4], 128  }
  0x24   :  { %88 = vsyncadd [#allocation4], 4294967168 }
  0x25   :  { %37 = vsyncpa [#allocation3], 1 }
  0x26   :  { %38 = vsyncpa [#allocation4], 1 }

</bundles_post_ra>
